<compile_context>
chip_gen: v5e
topology: v5e:2x2
jax: 0.10.0
libtpu: 0.0.40
codegen_flags: <defaults>
</compile_context>

<pallas_src>
import jax
import jax.numpy as jnp
from jax.experimental import pallas as pl
from jax.experimental.pallas import tpu as pltpu


# ----------------------------------------------------------------------------
# Kernel
# ----------------------------------------------------------------------------
def _make_kernel(s_valid, s_pad, use_mxu_context):
    def kernel(q_ref, k_ref, v_ref, w1_ref, b1_ref, w2_ref, b2_ref, vw_ref,
               vb_ref, ctx_ref, attn_ref):
        tb, s, d = k_ref.shape            # static block dims

        q = q_ref[...]                    # (TB, D)
        k = k_ref[...]                    # (TB, S, D)
        v = v_ref[...]                    # (TB, S, D)

        # W1(query): one (TB, D) @ (D, D) MXU matmul for the whole batch tile.
        qp = jnp.dot(q, w1_ref[...],
                     preferred_element_type=jnp.float32) + b1_ref[...]        # (TB, D)

        # W2(key): a single (TB*S, D) @ (D, D) matmul.  S is padded to a
        # multiple of 8 in the wrapper, so both reshapes are pure views.
        kp = jnp.dot(k.reshape(tb * s, d), w2_ref[...],
                     preferred_element_type=jnp.float32) + b2_ref[...]        # (TB*S, D)
        kp = kp.reshape(tb, s, d)

        # tanh(W2(key) + W1(query).unsqueeze(1))
        h = jnp.tanh(kp + qp[:, None, :])                                     # (TB, S, D)

        # V(h).squeeze(-1): degenerate D->1 projection as VPU multiply + lane
        # reduce, keeping the score lane-dense; V bias is a scalar from SMEM.
        score = jnp.sum(h * vw_ref[...], axis=-1) + vb_ref[0]                 # (TB, S)

        if s_valid < s_pad:  # static branch: only emitted when S was padded
            lane = jax.lax.broadcasted_iota(jnp.int32, (tb, s), 1)
            score = jnp.where(lane < s_valid, score, -jnp.inf)

        # Numerically stable softmax over the sequence axis.
        m = jnp.max(score, axis=-1, keepdims=True)                            # (TB, 1)
        e = jnp.exp(score - m)                                                # (TB, S)
        denom = jnp.sum(e, axis=-1, keepdims=True)                            # (TB, 1)
        # Exact reciprocal keeps the 1e-5 tolerance; approx=True is the free
        # EUP-slot upgrade if looser tolerance is acceptable.
        attn = e * pl.reciprocal(denom)                                       # (TB, S)

        if use_mxu_context:
            # context = bmm(attn.unsqueeze(1), value): batched (1,S)@(S,D) on
            # the MXU — only worth it when S*D is large enough to fill it.
            ctx = jnp.einsum("ts,tsd->td", attn, v,
                             preferred_element_type=jnp.float32)              # (TB, D)
        else:
            # Small/medium S: broadcast-mul + sublane reduce on VPU/XLU slots
            # (M=1 batched matmuls badly under-fill the MXU).
            ctx = jnp.sum(attn[:, :, None] * v, axis=1)                       # (TB, D)

        ctx_ref[...] = ctx
        attn_ref[...] = attn

    return kernel


# ----------------------------------------------------------------------------
# Device / tiling heuristics
# ----------------------------------------------------------------------------
def _vmem_capacity_bytes():
    try:
        cap = getattr(pltpu.get_tpu_info(), "vmem_capacity_bytes", None)
        if cap:
            return int(cap)
    except Exception:
        pass
    return 64 * 1024 * 1024          # conservative default (v7x: 64 MiB / TC)


def _tensorcores_per_chip():
    try:
        if "v7" in jax.devices()[0].device_kind.lower():
            return 2                 # v7x: 2 TensorCores share one chip
    except Exception:
        pass
    return 1                         # v5e / v6e: 1 TC per chip


def _per_row_vmem_bytes(s_pad, dim):
    # Double-buffered K and V blocks (+~3x S*D f32 for kp/h temporaries),
    # double-buffered query / context / attn blocks — per batch row, f32.
    return 4 * (7 * s_pad * dim + 4 * dim + 2 * s_pad)


def _fixed_vmem_bytes(dim):
    # W1^T, W2^T, biases, V-weight row (budgeted double-buffered to stay safe
    # even if the single-buffer request is ignored) + slack.
    return 8 * (2 * dim * dim + 3 * dim) + (1 << 16)


def _choose_batch_tile(batch, s_pad, dim, vmem_budget, num_cores):
    """Largest batch tile that (a) divides B, (b) fits the VMEM budget, and
    (c) keeps (TB, D)/(TB, S) blocks sublane-aligned (TB % 8 == 0 or TB == B).
    On a 2-TC chip (v7x) keep at least two grid steps so both cores get work;
    on 1-TC chips (v5e/v6e) extra steps are pure overhead, so maximize TB."""
    per_row = _per_row_vmem_bytes(s_pad, dim)
    avail = max(vmem_budget - _fixed_vmem_bytes(dim), per_row)
    cap = max(1, min(batch, avail // per_row))
    if num_cores >= 2 and batch >= 16:
        cap = min(cap, batch // 2)
    for tb in range(int(cap), 0, -1):
        if batch % tb == 0 and (tb == batch or tb % 8 == 0):
            return tb
    return batch                      # fallback: single step over the batch


def _vmem_limit_bytes(tb, s_pad, dim, capacity):
    need = tb * _per_row_vmem_bytes(s_pad, dim) + _fixed_vmem_bytes(dim) + (4 << 20)
    limit = max(need, 32 << 20)                  # at least the scoped default
    limit = min(limit, capacity - (8 << 20))     # leave compiler headroom
    return int(max(limit, 16 << 20))


# ----------------------------------------------------------------------------
# Wrapper
# ----------------------------------------------------------------------------
def prepare_params(params):
    """One-time parameter preprocessing (hoisted out of the per-call path):
    transposes to x @ w orientation, bias/V-weight reshapes, scalar V bias."""
    d = params["w1"].shape[0]
    return {
        "w1t": jnp.asarray(params["w1"], jnp.float32).T,          # (D, D)
        "w2t": jnp.asarray(params["w2"], jnp.float32).T,          # (D, D)
        "b1": jnp.asarray(params["b1"], jnp.float32).reshape(1, d),
        "b2": jnp.asarray(params["b2"], jnp.float32).reshape(1, d),
        "vw": jnp.asarray(params["vw"], jnp.float32).reshape(1, d),
        "vb": jnp.asarray(params["vb"], jnp.float32).reshape(1),  # SMEM scalar
    }


_WEIGHTS_SINGLE_BUFFER = None   # resolved on first call (pl.Buffered(1) probe)


def additive_attention(query, key, value, prepared):
    global _WEIGHTS_SINGLE_BUFFER
    B, S, D = key.shape

    # Pad S to a sublane multiple so the in-kernel reshape pair stays a view.
    s_pad = -(-S // 8) * 8
    if s_pad != S:
        pad = [(0, 0), (0, s_pad - S), (0, 0)]
        key = jnp.pad(key, pad)
        value = jnp.pad(value, pad)

    capacity = _vmem_capacity_bytes()
    num_cores = _tensorcores_per_chip()
    TB = _choose_batch_tile(B, s_pad, D, (capacity * 3) // 4, num_cores)
    vmem_limit = _vmem_limit_bytes(TB, s_pad, D, capacity)
    use_mxu_context = s_pad > 64

    kernel = _make_kernel(S, s_pad, use_mxu_context)

    def call(single_buffer_weights):
        def const_spec(shape):
            # Resident weight/bias blocks: constant index_map; single-buffer
            # them so the freed VMEM can go into larger K/V tiles.
            if single_buffer_weights:
                return pl.BlockSpec(shape, lambda b: (0,) * len(shape),
                                    pipeline_mode=pl.Buffered(1))
            return pl.BlockSpec(shape, lambda b: (0,) * len(shape))

        return pl.pallas_call(
            kernel,
            out_shape=(
                jax.ShapeDtypeStruct((B, D), jnp.float32),         # context
                jax.ShapeDtypeStruct((B, s_pad), jnp.float32),     # attention
            ),
            grid=(B // TB,),
            in_specs=[
                pl.BlockSpec((TB, D), lambda b: (b, 0)),            # query
                pl.BlockSpec((TB, s_pad, D), lambda b: (b, 0, 0)),  # key
                pl.BlockSpec((TB, s_pad, D), lambda b: (b, 0, 0)),  # value
                const_spec((D, D)),                                 # W1^T
                const_spec((1, D)),                                 # b1
                const_spec((D, D)),                                 # W2^T
                const_spec((1, D)),                                 # b2
                const_spec((1, D)),                                 # V weight row
                pl.BlockSpec(memory_space=pltpu.MemorySpace.SMEM),  # V bias scalar
            ],
            out_specs=(
                pl.BlockSpec((TB, D), lambda b: (b, 0)),            # context
                pl.BlockSpec((TB, s_pad), lambda b: (b, 0)),        # attn
            ),
            compiler_params=pltpu.CompilerParams(
                dimension_semantics=("parallel",),
                vmem_limit_bytes=vmem_limit,
            ),
        )(query, key, value,
          prepared["w1t"], prepared["b1"], prepared["w2t"], prepared["b2"],
          prepared["vw"], prepared["vb"])

    if _WEIGHTS_SINGLE_BUFFER is None:
        try:
            ctx, attn = call(True)
            jax.block_until_ready((ctx, attn))
            _WEIGHTS_SINGLE_BUFFER = True
        except Exception:
            # jax version without pipeline_mode=Buffered(1) support: fall back
            # to default double-buffered weight blocks (identical results).
            _WEIGHTS_SINGLE_BUFFER = False
            ctx, attn = call(False)
    else:
        ctx, attn = call(_WEIGHTS_SINGLE_BUFFER)

    return ctx, attn[:, :S]


# ----------------------------------------------------------------------------
# Params / reference / demo
# ----------------------------------------------------------------------------
def init_params(key, dim):
    # nn.Linear-shaped params: weight (out, in), bias (out,), U(-1/sqrt(in), 1/sqrt(in)).
    ks = jax.random.split(key, 6)
    bound = 1.0 / jnp.sqrt(dim)
    u = lambda k, shape: jax.random.uniform(k, shape, jnp.float32, -bound, bound)
    return {
        "w1": u(ks[0], (dim, dim)), "b1": u(ks[1], (dim,)),
        "w2": u(ks[2], (dim, dim)), "b2": u(ks[3], (dim,)),
        "vw": u(ks[4], (1, dim)),   "vb": u(ks[5], (1,)),
    }


def reference(query, key, value, p):
    qp = query @ p["w1"].T + p["b1"]                      # (B, D)
    kp = key @ p["w2"].T + p["b2"]                        # (B, S, D)
    h = jnp.tanh(kp + qp[:, None, :])                     # (B, S, D)
    score = (h @ p["vw"].T + p["vb"])[..., 0]             # (B, S)
    attn = jax.nn.softmax(score, axis=-1)
    ctx = jnp.einsum("bs,bsd->bd", attn, value)
    return ctx, attn


if __name__ == "__main__":
    B, S, D = 4, 8, 32
    root = jax.random.PRNGKey(0)
    kq, kk, kv, kp = jax.random.split(root, 4)

    query = jax.random.normal(kq, (B, D), jnp.float32)
    key = jax.random.normal(kk, (B, S, D), jnp.float32)
    value = jax.random.normal(kv, (B, S, D), jnp.float32)
    params = init_params(kp, D)
    prepared = prepare_params(params)     # one-time preprocessing (hoisted)

    ctx, attn = additive_attention(query, key, value, prepared)
    jax.block_until_ready((ctx, attn))

    ctx_ref, attn_ref = reference(query, key, value, params)
    assert ctx.shape == (B, D) and attn.shape == (B, S)
    assert jnp.allclose(ctx, ctx_ref, atol=1e-5, rtol=1e-5)
    assert jnp.allclose(attn, attn_ref, atol=1e-5, rtol=1e-5)

    print("KERNEL_OK")
</pallas_src>

<mosaic_0001>
module attributes {stable_mosaic.version = 11 : i64} {
  func.func @kernel(%arg0: i32, %arg1: memref<4x32xf32, #tpu.memory_space<vmem>>, %arg2: memref<4x8x32xf32, #tpu.memory_space<vmem>>, %arg3: memref<4x8x32xf32, #tpu.memory_space<vmem>>, %arg4: memref<32x32xf32, #tpu.memory_space<vmem>>, %arg5: memref<1x32xf32, #tpu.memory_space<vmem>>, %arg6: memref<32x32xf32, #tpu.memory_space<vmem>>, %arg7: memref<1x32xf32, #tpu.memory_space<vmem>>, %arg8: memref<1x32xf32, #tpu.memory_space<vmem>>, %arg9: memref<1xf32, #tpu.memory_space<smem>>, %arg10: memref<4x32xf32, #tpu.memory_space<vmem>>, %arg11: memref<4x8xf32, #tpu.memory_space<vmem>>) attributes {dimension_semantics = [#tpu.dimension_semantics<parallel>], iteration_bounds = array<i64: 1>, scalar_prefetch = 0 : i64, scratch_operands = 0 : i64, tpu.core_type = #tpu.core_type<tc>, window_params = [{transform_indices = @transform_0, window_bounds = array<i64: 4, 32>}, {transform_indices = @transform_1, window_bounds = array<i64: 4, 8, 32>}, {transform_indices = @transform_2, window_bounds = array<i64: 4, 8, 32>}, {pipeline_mode = #tpu.pipeline_mode<synchronous>, transform_indices = @transform_3, window_bounds = array<i64: 32, 32>}, {pipeline_mode = #tpu.pipeline_mode<synchronous>, transform_indices = @transform_4, window_bounds = array<i64: 1, 32>}, {pipeline_mode = #tpu.pipeline_mode<synchronous>, transform_indices = @transform_5, window_bounds = array<i64: 32, 32>}, {pipeline_mode = #tpu.pipeline_mode<synchronous>, transform_indices = @transform_6, window_bounds = array<i64: 1, 32>}, {pipeline_mode = #tpu.pipeline_mode<synchronous>, transform_indices = @transform_7, window_bounds = array<i64: 1, 32>}, {transform_indices = @transform_8, window_bounds = array<i64: 1>}, {transform_indices = @transform_9, window_bounds = array<i64: 4, 32>}, {transform_indices = @transform_10, window_bounds = array<i64: 4, 8>}]} {
    %c0 = arith.constant 0 : index
    %c0_0 = arith.constant 0 : index
    %0 = vector.load %arg1[%c0, %c0_0] : memref<4x32xf32, #tpu.memory_space<vmem>>, vector<4x32xf32>
    %c0_1 = arith.constant 0 : index
    %c0_2 = arith.constant 0 : index
    %c0_3 = arith.constant 0 : index
    %1 = vector.load %arg2[%c0_1, %c0_2, %c0_3] : memref<4x8x32xf32, #tpu.memory_space<vmem>>, vector<4x8x32xf32>
    %c0_4 = arith.constant 0 : index
    %c0_5 = arith.constant 0 : index
    %c0_6 = arith.constant 0 : index
    %2 = vector.load %arg3[%c0_4, %c0_5, %c0_6] : memref<4x8x32xf32, #tpu.memory_space<vmem>>, vector<4x8x32xf32>
    %c0_7 = arith.constant 0 : index
    %c0_8 = arith.constant 0 : index
    %3 = vector.load %arg4[%c0_7, %c0_8] : memref<32x32xf32, #tpu.memory_space<vmem>>, vector<32x32xf32>
    %cst = arith.constant dense<0.000000e+00> : vector<4x32xf32>
    %4 = tpu.matmul %0, %3, %cst {dimension_numbers = #tpu.dot_dimension_numbers<[1], [0], [0], [1], [0, 0, 1, 1], [], []>} : vector<4x32xf32>, vector<32x32xf32>, vector<4x32xf32> -> vector<4x32xf32>
    %c0_9 = arith.constant 0 : index
    %c0_10 = arith.constant 0 : index
    %5 = vector.load %arg5[%c0_9, %c0_10] : memref<1x32xf32, #tpu.memory_space<vmem>>, vector<1x32xf32>
    %6 = vector.broadcast %5 : vector<1x32xf32> to vector<4x32xf32>
    %7 = arith.addf %4, %6 : vector<4x32xf32>
    %8 = vector.shape_cast %1 : vector<4x8x32xf32> to vector<32x32xf32>
    %c0_11 = arith.constant 0 : index
    %c0_12 = arith.constant 0 : index
    %9 = vector.load %arg6[%c0_11, %c0_12] : memref<32x32xf32, #tpu.memory_space<vmem>>, vector<32x32xf32>
    %cst_13 = arith.constant dense<0.000000e+00> : vector<32x32xf32>
    %10 = tpu.matmul %8, %9, %cst_13 {dimension_numbers = #tpu.dot_dimension_numbers<[1], [0], [0], [1], [0, 0, 1, 1], [], []>} : vector<32x32xf32>, vector<32x32xf32>, vector<32x32xf32> -> vector<32x32xf32>
    %c0_14 = arith.constant 0 : index
    %c0_15 = arith.constant 0 : index
    %11 = vector.load %arg7[%c0_14, %c0_15] : memref<1x32xf32, #tpu.memory_space<vmem>>, vector<1x32xf32>
    %12 = vector.broadcast %11 : vector<1x32xf32> to vector<32x32xf32>
    %13 = arith.addf %10, %12 : vector<32x32xf32>
    %14 = vector.shape_cast %13 : vector<32x32xf32> to vector<4x8x32xf32>
    %15 = vector.shape_cast %7 : vector<4x32xf32> to vector<4x1x32xf32>
    %16 = vector.broadcast %15 : vector<4x1x32xf32> to vector<4x8x32xf32>
    %17 = arith.addf %14, %16 : vector<4x8x32xf32>
    %18 = math.tanh %17 : vector<4x8x32xf32>
    %c0_16 = arith.constant 0 : index
    %c0_17 = arith.constant 0 : index
    %19 = vector.load %arg8[%c0_16, %c0_17] : memref<1x32xf32, #tpu.memory_space<vmem>>, vector<1x32xf32>
    %20 = vector.shape_cast %19 : vector<1x32xf32> to vector<1x1x32xf32>
    %21 = vector.broadcast %20 : vector<1x1x32xf32> to vector<4x8x32xf32>
    %22 = arith.mulf %18, %21 : vector<4x8x32xf32>
    %cst_18 = arith.constant dense<0.000000e+00> : vector<4x8xf32>
    %23 = vector.multi_reduction <add>, %22, %cst_18 [2] : vector<4x8x32xf32> to vector<4x8xf32>
    %c0_19 = arith.constant 0 : index
    %24 = memref.load %arg9[%c0_19] : memref<1xf32, #tpu.memory_space<smem>>
    %25 = vector.broadcast %24 : f32 to vector<4x8xf32>
    %26 = arith.addf %23, %25 : vector<4x8xf32>
    %cst_20 = arith.constant dense<0xFF800000> : vector<4xf32>
    %27 = vector.multi_reduction <maximumf>, %26, %cst_20 [1] : vector<4x8xf32> to vector<4xf32>
    %28 = vector.shape_cast %27 : vector<4xf32> to vector<4x1xf32>
    %29 = vector.broadcast %28 : vector<4x1xf32> to vector<4x8xf32>
    %30 = arith.subf %26, %29 : vector<4x8xf32>
    %31 = math.exp %30 : vector<4x8xf32>
    %cst_21 = arith.constant dense<0.000000e+00> : vector<4xf32>
    %32 = vector.multi_reduction <add>, %31, %cst_21 [1] : vector<4x8xf32> to vector<4xf32>
    %33 = vector.shape_cast %32 : vector<4xf32> to vector<4x1xf32>
    %34 = tpu.reciprocal %33 : vector<4x1xf32> -> vector<4x1xf32>
    %35 = vector.broadcast %34 : vector<4x1xf32> to vector<4x8xf32>
    %36 = arith.mulf %31, %35 : vector<4x8xf32>
    %37 = vector.shape_cast %36 : vector<4x8xf32> to vector<4x8x1xf32>
    %38 = vector.broadcast %37 : vector<4x8x1xf32> to vector<4x8x32xf32>
    %39 = arith.mulf %38, %2 : vector<4x8x32xf32>
    %cst_22 = arith.constant dense<0.000000e+00> : vector<4x32xf32>
    %40 = vector.multi_reduction <add>, %39, %cst_22 [1] : vector<4x8x32xf32> to vector<4x32xf32>
    %c0_23 = arith.constant 0 : index
    %c0_24 = arith.constant 0 : index
    %41 = vector.load %arg10[%c0_23, %c0_24] : memref<4x32xf32, #tpu.memory_space<vmem>>, vector<4x32xf32>
    tpu.vector_store %arg10[%c0_23, %c0_24], %40 {strides = array<i32>} : memref<4x32xf32, #tpu.memory_space<vmem>>, vector<4x32xf32>,
    %c0_25 = arith.constant 0 : index
    %c0_26 = arith.constant 0 : index
    %42 = vector.load %arg11[%c0_25, %c0_26] : memref<4x8xf32, #tpu.memory_space<vmem>>, vector<4x8xf32>
    tpu.vector_store %arg11[%c0_25, %c0_26], %36 {strides = array<i32>} : memref<4x8xf32, #tpu.memory_space<vmem>>, vector<4x8xf32>,
    return
  }
  func.func @transform_0(%arg0: i32) -> (i32, i32) {
    %c0_i32 = arith.constant 0 : i32
    %c0_i32_0 = arith.constant 0 : i32
    return %arg0, %c0_i32 : i32, i32
  }
  func.func @transform_1(%arg0: i32) -> (i32, i32, i32) {
    %c0_i32 = arith.constant 0 : i32
    %c0_i32_0 = arith.constant 0 : i32
    %c0_i32_1 = arith.constant 0 : i32
    return %arg0, %c0_i32, %c0_i32_0 : i32, i32, i32
  }
  func.func @transform_2(%arg0: i32) -> (i32, i32, i32) {
    %c0_i32 = arith.constant 0 : i32
    %c0_i32_0 = arith.constant 0 : i32
    %c0_i32_1 = arith.constant 0 : i32
    return %arg0, %c0_i32, %c0_i32_0 : i32, i32, i32
  }
  func.func @transform_3(%arg0: i32) -> (i32, i32) {
    %c0_i32 = arith.constant 0 : i32
    %c0_i32_0 = arith.constant 0 : i32
    %c0_i32_1 = arith.constant 0 : i32
    return %c0_i32, %c0_i32_0 : i32, i32
  }
  func.func @transform_4(%arg0: i32) -> (i32, i32) {
    %c0_i32 = arith.constant 0 : i32
    %c0_i32_0 = arith.constant 0 : i32
    %c0_i32_1 = arith.constant 0 : i32
    return %c0_i32, %c0_i32_0 : i32, i32
  }
  func.func @transform_5(%arg0: i32) -> (i32, i32) {
    %c0_i32 = arith.constant 0 : i32
    %c0_i32_0 = arith.constant 0 : i32
    %c0_i32_1 = arith.constant 0 : i32
    return %c0_i32, %c0_i32_0 : i32, i32
  }
  func.func @transform_6(%arg0: i32) -> (i32, i32) {
    %c0_i32 = arith.constant 0 : i32
    %c0_i32_0 = arith.constant 0 : i32
    %c0_i32_1 = arith.constant 0 : i32
    return %c0_i32, %c0_i32_0 : i32, i32
  }
  func.func @transform_7(%arg0: i32) -> (i32, i32) {
    %c0_i32 = arith.constant 0 : i32
    %c0_i32_0 = arith.constant 0 : i32
    %c0_i32_1 = arith.constant 0 : i32
    return %c0_i32, %c0_i32_0 : i32, i32
  }
  func.func @transform_8(%arg0: i32) -> i32 {
    %c0_i32 = arith.constant 0 : i32
    %c0_i32_0 = arith.constant 0 : i32
    return %c0_i32 : i32
  }
  func.func @transform_9(%arg0: i32) -> (i32, i32) {
    %c0_i32 = arith.constant 0 : i32
    %c0_i32_0 = arith.constant 0 : i32
    return %arg0, %c0_i32 : i32, i32
  }
  func.func @transform_10(%arg0: i32) -> (i32, i32) {
    %c0_i32 = arith.constant 0 : i32
    %c0_i32_0 = arith.constant 0 : i32
    return %arg0, %c0_i32 : i32, i32
  }
}

module attributes {stable_mosaic.version = 11 : i64} {
  func.func @kernel(%arg0: i32, %arg1: memref<4x32xf32, #tpu.memory_space<vmem>>, %arg2: memref<4x8x32xf32, #tpu.memory_space<vmem>>, %arg3: memref<4x8x32xf32, #tpu.memory_space<vmem>>, %arg4: memref<32x32xf32, #tpu.memory_space<vmem>>, %arg5: memref<1x32xf32, #tpu.memory_space<vmem>>, %arg6: memref<32x32xf32, #tpu.memory_space<vmem>>, %arg7: memref<1x32xf32, #tpu.memory_space<vmem>>, %arg8: memref<1x32xf32, #tpu.memory_space<vmem>>, %arg9: memref<1xf32, #tpu.memory_space<smem>>, %arg10: memref<4x32xf32, #tpu.memory_space<vmem>>, %arg11: memref<4x8xf32, #tpu.memory_space<vmem>>) attributes {dimension_semantics = [#tpu.dimension_semantics<parallel>], iteration_bounds = array<i64: 1>, scalar_prefetch = 0 : i64, scratch_operands = 0 : i64, tpu.core_type = #tpu.core_type<tc>, window_params = [{transform_indices = @transform_0, window_bounds = array<i64: 4, 32>}, {transform_indices = @transform_1, window_bounds = array<i64: 4, 8, 32>}, {transform_indices = @transform_2, window_bounds = array<i64: 4, 8, 32>}, {pipeline_mode = #tpu.pipeline_mode<synchronous>, transform_indices = @transform_3, window_bounds = array<i64: 32, 32>}, {pipeline_mode = #tpu.pipeline_mode<synchronous>, transform_indices = @transform_4, window_bounds = array<i64: 1, 32>}, {pipeline_mode = #tpu.pipeline_mode<synchronous>, transform_indices = @transform_5, window_bounds = array<i64: 32, 32>}, {pipeline_mode = #tpu.pipeline_mode<synchronous>, transform_indices = @transform_6, window_bounds = array<i64: 1, 32>}, {pipeline_mode = #tpu.pipeline_mode<synchronous>, transform_indices = @transform_7, window_bounds = array<i64: 1, 32>}, {transform_indices = @transform_8, window_bounds = array<i64: 1>}, {transform_indices = @transform_9, window_bounds = array<i64: 4, 32>}, {transform_indices = @transform_10, window_bounds = array<i64: 4, 8>}]} {
    %c0 = arith.constant 0 : index
    %c0_0 = arith.constant 0 : index
    %0 = vector.load %arg1[%c0, %c0_0] : memref<4x32xf32, #tpu.memory_space<vmem>>, vector<4x32xf32>
    %c0_1 = arith.constant 0 : index
    %c0_2 = arith.constant 0 : index
    %c0_3 = arith.constant 0 : index
    %1 = vector.load %arg2[%c0_1, %c0_2, %c0_3] : memref<4x8x32xf32, #tpu.memory_space<vmem>>, vector<4x8x32xf32>
    %c0_4 = arith.constant 0 : index
    %c0_5 = arith.constant 0 : index
    %c0_6 = arith.constant 0 : index
    %2 = vector.load %arg3[%c0_4, %c0_5, %c0_6] : memref<4x8x32xf32, #tpu.memory_space<vmem>>, vector<4x8x32xf32>
    %c0_7 = arith.constant 0 : index
    %c0_8 = arith.constant 0 : index
    %3 = vector.load %arg4[%c0_7, %c0_8] : memref<32x32xf32, #tpu.memory_space<vmem>>, vector<32x32xf32>
    %cst = arith.constant dense<0.000000e+00> : vector<4x32xf32>
    %4 = tpu.matmul %0, %3, %cst {dimension_numbers = #tpu.dot_dimension_numbers<[1], [0], [0], [1], [0, 0, 1, 1], [], []>} : vector<4x32xf32>, vector<32x32xf32>, vector<4x32xf32> -> vector<4x32xf32>
    %c0_9 = arith.constant 0 : index
    %c0_10 = arith.constant 0 : index
    %5 = vector.load %arg5[%c0_9, %c0_10] : memref<1x32xf32, #tpu.memory_space<vmem>>, vector<1x32xf32>
    %6 = vector.broadcast %5 : vector<1x32xf32> to vector<4x32xf32>
    %7 = arith.addf %4, %6 : vector<4x32xf32>
    %8 = vector.shape_cast %1 : vector<4x8x32xf32> to vector<32x32xf32>
    %c0_11 = arith.constant 0 : index
    %c0_12 = arith.constant 0 : index
    %9 = vector.load %arg6[%c0_11, %c0_12] : memref<32x32xf32, #tpu.memory_space<vmem>>, vector<32x32xf32>
    %cst_13 = arith.constant dense<0.000000e+00> : vector<32x32xf32>
    %10 = tpu.matmul %8, %9, %cst_13 {dimension_numbers = #tpu.dot_dimension_numbers<[1], [0], [0], [1], [0, 0, 1, 1], [], []>} : vector<32x32xf32>, vector<32x32xf32>, vector<32x32xf32> -> vector<32x32xf32>
    %c0_14 = arith.constant 0 : index
    %c0_15 = arith.constant 0 : index
    %11 = vector.load %arg7[%c0_14, %c0_15] : memref<1x32xf32, #tpu.memory_space<vmem>>, vector<1x32xf32>
    %12 = vector.broadcast %11 : vector<1x32xf32> to vector<32x32xf32>
    %13 = arith.addf %10, %12 : vector<32x32xf32>
    %14 = vector.shape_cast %13 : vector<32x32xf32> to vector<4x8x32xf32>
    %15 = vector.shape_cast %7 : vector<4x32xf32> to vector<4x1x32xf32>
    %16 = vector.broadcast %15 : vector<4x1x32xf32> to vector<4x8x32xf32>
    %17 = arith.addf %14, %16 : vector<4x8x32xf32>
    %18 = math.tanh %17 : vector<4x8x32xf32>
    %c0_16 = arith.constant 0 : index
    %c0_17 = arith.constant 0 : index
    %19 = vector.load %arg8[%c0_16, %c0_17] : memref<1x32xf32, #tpu.memory_space<vmem>>, vector<1x32xf32>
    %20 = vector.shape_cast %19 : vector<1x32xf32> to vector<1x1x32xf32>
    %21 = vector.broadcast %20 : vector<1x1x32xf32> to vector<4x8x32xf32>
    %22 = arith.mulf %18, %21 : vector<4x8x32xf32>
    %cst_18 = arith.constant dense<0.000000e+00> : vector<4x8xf32>
    %23 = vector.multi_reduction <add>, %22, %cst_18 [2] : vector<4x8x32xf32> to vector<4x8xf32>
    %c0_19 = arith.constant 0 : index
    %24 = memref.load %arg9[%c0_19] : memref<1xf32, #tpu.memory_space<smem>>
    %25 = vector.broadcast %24 : f32 to vector<4x8xf32>
    %26 = arith.addf %23, %25 : vector<4x8xf32>
    %cst_20 = arith.constant dense<0xFF800000> : vector<4xf32>
    %27 = vector.multi_reduction <maximumf>, %26, %cst_20 [1] : vector<4x8xf32> to vector<4xf32>
    %28 = vector.shape_cast %27 : vector<4xf32> to vector<4x1xf32>
    %29 = vector.broadcast %28 : vector<4x1xf32> to vector<4x8xf32>
    %30 = arith.subf %26, %29 : vector<4x8xf32>
    %31 = math.exp %30 : vector<4x8xf32>
    %cst_21 = arith.constant dense<0.000000e+00> : vector<4xf32>
    %32 = vector.multi_reduction <add>, %31, %cst_21 [1] : vector<4x8xf32> to vector<4xf32>
    %33 = vector.shape_cast %32 : vector<4xf32> to vector<4x1xf32>
    %34 = tpu.reciprocal %33 : vector<4x1xf32> -> vector<4x1xf32>
    %35 = vector.broadcast %34 : vector<4x1xf32> to vector<4x8xf32>
    %36 = arith.mulf %31, %35 : vector<4x8xf32>
    %37 = vector.shape_cast %36 : vector<4x8xf32> to vector<4x8x1xf32>
    %38 = vector.broadcast %37 : vector<4x8x1xf32> to vector<4x8x32xf32>
    %39 = arith.mulf %38, %2 : vector<4x8x32xf32>
    %cst_22 = arith.constant dense<0.000000e+00> : vector<4x32xf32>
    %40 = vector.multi_reduction <add>, %39, %cst_22 [1] : vector<4x8x32xf32> to vector<4x32xf32>
    %c0_23 = arith.constant 0 : index
    %c0_24 = arith.constant 0 : index
    %41 = vector.load %arg10[%c0_23, %c0_24] : memref<4x32xf32, #tpu.memory_space<vmem>>, vector<4x32xf32>
    tpu.vector_store %arg10[%c0_23, %c0_24], %40 {strides = array<i32>} : memref<4x32xf32, #tpu.memory_space<vmem>>, vector<4x32xf32>,
    %c0_25 = arith.constant 0 : index
    %c0_26 = arith.constant 0 : index
    %42 = vector.load %arg11[%c0_25, %c0_26] : memref<4x8xf32, #tpu.memory_space<vmem>>, vector<4x8xf32>
    tpu.vector_store %arg11[%c0_25, %c0_26], %36 {strides = array<i32>} : memref<4x8xf32, #tpu.memory_space<vmem>>, vector<4x8xf32>,
    return
  }
  func.func @transform_0(%arg0: i32) -> (i32, i32) {
    %c0_i32 = arith.constant 0 : i32
    %c0_i32_0 = arith.constant 0 : i32
    return %arg0, %c0_i32 : i32, i32
  }
  func.func @transform_1(%arg0: i32) -> (i32, i32, i32) {
    %c0_i32 = arith.constant 0 : i32
    %c0_i32_0 = arith.constant 0 : i32
    %c0_i32_1 = arith.constant 0 : i32
    return %arg0, %c0_i32, %c0_i32_0 : i32, i32, i32
  }
  func.func @transform_2(%arg0: i32) -> (i32, i32, i32) {
    %c0_i32 = arith.constant 0 : i32
    %c0_i32_0 = arith.constant 0 : i32
    %c0_i32_1 = arith.constant 0 : i32
    return %arg0, %c0_i32, %c0_i32_0 : i32, i32, i32
  }
  func.func @transform_3(%arg0: i32) -> (i32, i32) {
    %c0_i32 = arith.constant 0 : i32
    %c0_i32_0 = arith.constant 0 : i32
    %c0_i32_1 = arith.constant 0 : i32
    return %c0_i32, %c0_i32_0 : i32, i32
  }
  func.func @transform_4(%arg0: i32) -> (i32, i32) {
    %c0_i32 = arith.constant 0 : i32
    %c0_i32_0 = arith.constant 0 : i32
    %c0_i32_1 = arith.constant 0 : i32
    return %c0_i32, %c0_i32_0 : i32, i32
  }
  func.func @transform_5(%arg0: i32) -> (i32, i32) {
    %c0_i32 = arith.constant 0 : i32
    %c0_i32_0 = arith.constant 0 : i32
    %c0_i32_1 = arith.constant 0 : i32
    return %c0_i32, %c0_i32_0 : i32, i32
  }
  func.func @transform_6(%arg0: i32) -> (i32, i32) {
    %c0_i32 = arith.constant 0 : i32
    %c0_i32_0 = arith.constant 0 : i32
    %c0_i32_1 = arith.constant 0 : i32
    return %c0_i32, %c0_i32_0 : i32, i32
  }
  func.func @transform_7(%arg0: i32) -> (i32, i32) {
    %c0_i32 = arith.constant 0 : i32
    %c0_i32_0 = arith.constant 0 : i32
    %c0_i32_1 = arith.constant 0 : i32
    return %c0_i32, %c0_i32_0 : i32, i32
  }
  func.func @transform_8(%arg0: i32) -> i32 {
    %c0_i32 = arith.constant 0 : i32
    %c0_i32_0 = arith.constant 0 : i32
    return %c0_i32 : i32
  }
  func.func @transform_9(%arg0: i32) -> (i32, i32) {
    %c0_i32 = arith.constant 0 : i32
    %c0_i32_0 = arith.constant 0 : i32
    return %arg0, %c0_i32 : i32, i32
  }
  func.func @transform_10(%arg0: i32) -> (i32, i32) {
    %c0_i32 = arith.constant 0 : i32
    %c0_i32_0 = arith.constant 0 : i32
    return %arg0, %c0_i32 : i32, i32
  }
}

</mosaic_0001>

<bundles_post_ra>
// kernel: tpu_custom_call.1
= control target key start
LH: loop header
LB: loop body
LE: loop exit
PB: predicated region body
PF: predicated region fallthrough
CT: control target
= control target key end

     0   :  { %17 = vsyncpa [#allocation4], 0  ;;  %s816_s0 = inlined_call_operand.hbm [shape: f32[4,32], index: 0, kind: input, shape index: {}]   ;;  %s817_s1 = inlined_call_operand.hbm [shape: f32[4,8,32], index: 1, kind: input, shape index: {}]   ;;  %s818_s2 = inlined_call_operand.hbm [shape: f32[4,8,32], index: 2, kind: input, shape index: {}]   ;;  %s819_s3 = inlined_call_operand.hbm [shape: f32[32,32], index: 3, kind: input, shape index: {}]   ;;  %s820_s4 = inlined_call_operand.vmem [shape: f32[1,32], index: 4, kind: input, shape index: {}]   ;;  %s821_s5 = inlined_call_operand.hbm [shape: f32[32,32], index: 5, kind: input, shape index: {}]   ;;  %s822_s6 = inlined_call_operand.vmem [shape: f32[1,32], index: 6, kind: input, shape index: {}]   ;;  %s823_s7 = inlined_call_operand.vmem [shape: f32[1,32], index: 7, kind: input, shape index: {}]   ;;  %s824_s8 = inlined_call_operand.<no memory space> [shape: f32[1], index: 8, kind: input, shape index: {}]   ;;  %s825_s9 = inlined_call_operand.hbm [shape: f32[4,32], index: 9, kind: output, shape index: {0}]   ;;  %s826_s10 = inlined_call_operand.hbm [shape: f32[4,8], index: 10, kind: output, shape index: {1}]  }
   0x1   :  { %18 = vsyncpa [#allocation7], 0 }
   0x2   :  { %19 = vsyncpa [#allocation10], 0 }
   0x3   :  { %20 = vsyncpa [#allocation5], 0  ;;  %s37_s15 = sshll.u32 %s817_s1, 4  ;;  %s38_s15 = int_to_ptr.hbm [resolvable:$true] %s37_s15 }
   0x4   :  { %21 = vsyncpa [#allocation14], 0  ;;  %s676_s16 = smov [#allocation6]   ;;  %s63_s20 = sshll.u32 %s819_s3, 4  ;;  %s64_s20 = int_to_ptr.hbm [resolvable:$true] %s63_s20 }
   0x5   :  { %s39_s17 = sshll.u32 %s676_s16, 4  ;;  %s677_s21 = smov 128   ;;  %s40_s17 = int_to_ptr.vmem [resolvable:$true] %s39_s17 }
   0x6   :  { %s678_s22 = smov 8   ;;  %s679_s23 = smov [#allocation9]  }
   0x7   :  { %45 = dma.hbm_to_vmem [thread:$0]  %s38_s15, 512, %s40_s17, [#allocation7], %s677_s21, %s677_s21, %s678_s22  }
   0x8   :  { %s65_s24 = sshll.u32 %s679_s23, 4  ;;  %s27_s27 = sshll.u32 %s816_s0, 4  ;;  %s66_s24 = int_to_ptr.vmem [resolvable:$true] %s65_s24  ;;  %s28_s27 = int_to_ptr.hbm [resolvable:$true] %s27_s27 }
   0x9   :  { %71 = dma.hbm_to_vmem [thread:$0]  %s64_s20, 512, %s66_s24, [#allocation10], %s677_s21, %s677_s21, %s678_s22  }
   0xa   :  { %s50_s29 = sshll.u32 %s818_s2, 4  ;;  %s680_s30 = smov [#allocation3]   ;;  %s51_s29 = int_to_ptr.hbm [resolvable:$true] %s50_s29 }
   0xb   :  { %s29_s11 = sshll.u32 %s680_s30, 4  ;;  %s681_s3 = smov [#allocation8]   ;;  %s30_s11 = int_to_ptr.vmem [resolvable:$true] %s29_s11 }
   0xc   :  { %32 = dma.hbm_to_vmem [thread:$0]  %s28_s27, 64, %s30_s11, [#allocation4]  }
   0xd   :  { %s52_s12 = sshll.u32 %s681_s3, 4  ;;  %s78_s15 = sshll.u32 %s821_s5, 4  ;;  %s53_s12 = int_to_ptr.vmem [resolvable:$true] %s52_s12  ;;  %s79_s15 = int_to_ptr.hbm [resolvable:$true] %s78_s15 }
   0xe   :  { %58 = dma.hbm_to_vmem [thread:$0]  %s51_s29, 512, %s53_s12, [#allocation7], %s677_s21, %s677_s21, %s678_s22  }
   0xf   :  { %s682_s0 = smov [#allocation11]  }
  0x10   :  { %s80_s16 = sshll.u32 %s682_s0, 4  ;;  %s81_s16 = int_to_ptr.vmem [resolvable:$true] %s80_s16 }
  0x11   :  { %86 = dma.hbm_to_vmem [thread:$0]  %s79_s15, 512, %s81_s16, [#allocation10], %s677_s21, %s677_s21, %s678_s22  }
  0x12   :  { %666 = dma.done.wait [#allocation4], 64  }
  0x13   :  { %667 = vsyncadd [#allocation4], 4294967232 }
  0x14   :  { %668 = dma.done.wait [#allocation7], 1024  }
  0x15   :  { %669 = vsyncadd [#allocation7], 4294966272 }
  0x16   :  { %670 = dma.done.wait [#allocation10], 1024  }
  0x17   :  { %671 = vsyncadd [#allocation10], 4294966272  ;;  %v125_v0 = vld [vmem:[#allocation9 + $0x18] sm:$0xff]  ;;  %v124_v2 = vld [vmem:[#allocation9 + $0x10] sm:$0xff]  ;;  %vm130_vm0 = vcmask 261120   ;;  %v253_v50 = vlaneseq  ;;  %v244_v51 = vstv %s824_s8  ;;  %vm259_vm1 = vcmask 1041409  }
  0x18   :  { %v157_v1 = vld [vmem:[#allocation11 + $0x18] sm:$0xff]  ;;  %146 = vmatpush.msra.mxu0 %v125_v0  ;;  %v156_v3 = vld [vmem:[#allocation11 + $0x10] sm:$0xff]  ;;  %v123_v4 = vld [vmem:[#allocation9 + $0x8] sm:$0xff]  ;;  %vm261_vm2 = vcmask 1042434   ;;  %vm263_vm3 = vcmask 1043459   ;;  %vm266_vm4 = vcmask 60416  }
  0x19   :  { %456 = vmatpush.msra.mxu2 %v157_v1  ;;  %457 = vmatpush.msra.mxu3 %v157_v1  ;;  %v155_v5 = vld [vmem:[#allocation11 + $0x8] sm:$0xff]  ;;  %v122_v6 = vld [vmem:[#allocation9] sm:$0xff]  ;;  %v113_v8 = vld [vmem:[#allocation3] sm:$0xf]  ;;  %v777_v53 = vand.u32 127, %v253_v50  ;;  %s684_s8 = smov [#allocation13]  }
  0x1a   :  { %186 = vmatpush.msra.mxu1 %v157_v1  ;;  %147 = vmatpush.msra.mxu0 %v124_v2  ;;  %v154_v7 = vld [vmem:[#allocation11] sm:$0xff]  ;;  %v115_v9 = vld [vmem:[#allocation6 + $0x8] sm:$0xff]  ;;  %v116_v10 = vld [vmem:[#allocation6 + $0x10] sm:$0xff]  ;;  %s432_s20 = sshll.u32 %s684_s8, 4  ;;  %s434_s23 = sshll.u32 %s826_s10, 4  ;;  %vm405_vm9 = vcmask 257024   ;;  %s433_s20 = int_to_ptr.vmem [resolvable:$true] %s432_s20  ;;  %s435_s23 = int_to_ptr.hbm [resolvable:$true] %s434_s23 }
  0x1b   :  { %458 = vmatpush.msra.mxu2 %v156_v3  ;;  %459 = vmatpush.msra.mxu3 %v156_v3  ;;  %v114_v11 = vld [vmem:[#allocation6] sm:$0xff]  ;;  %v117_v12 = vld [vmem:[#allocation6 + $0x18] sm:$0xff]  ;;  %s685_s10 = smov [#allocation12]   ;;  %s423_s27 = sshll.u32 %s825_s9, 4  ;;  %s424_s27 = int_to_ptr.hbm [resolvable:$true] %s423_s27 }
  0x1c   :  { %187 = vmatpush.msra.mxu1 %v156_v3  ;;  %148 = vmatpush.msra.mxu0 %v123_v4  ;;  %v477_v13 = vld [vmem:[%s820_s4] ss:$0 sm:$0xff]  ;;  %v683_v4 = vmov 0   ;;  %s421_s24 = sshll.u32 %s685_s10, 4  ;;  %s422_s24 = int_to_ptr.vmem [resolvable:$true] %s421_s24 }
  0x1d   :  { %460 = vmatpush.msra.mxu2 %v155_v5  ;;  %461 = vmatpush.msra.mxu3 %v155_v5  ;;  %v478_v15 = vld [vmem:[%s822_s6] ss:$0 sm:$0xff] }
  0x1e   :  { %188 = vmatpush.msra.mxu1 %v155_v5  ;;  %149 = vmatpush.msra.mxu0 %v122_v6  ;;  %v479_v31 = vld [vmem:[%s823_s7] ss:$0 sm:$0xff] }
  0x1f   :  { %462 = vmatpush.msra.mxu2 %v154_v7  ;;  %463 = vmatpush.msra.mxu3 %v154_v7 }
  0x20   :  { %451 = vmatmul.msk.f32.vlgmr.msra.gmra.mxu0 %vm130_vm0, %v113_v8  ;;  %453 = vmatmul.msk.f32.vlgmr.msra.gmra.mxu2 %vm130_vm0, %v115_v9 }
  0x21   :  { %454 = vmatmul.msk.f32.vlgmr.msra.gmra.mxu3 %vm130_vm0, %v116_v10  ;;  %189 = vmatpush.msra.mxu1 %v154_v7 }
  0x22   :  { %452 = vmatmul.msk.f32.vlgmr.msra.gmra.mxu1 %vm130_vm0, %v114_v11  ;;  %476 = vset.pattern.permute.xlu1 %v683_v4 }
  0x23   :  { %475 = vset.pattern.permute.xlu0 %v683_v4  ;;  %474 = vset.pattern.permute.xlu2 %v683_v4 }
  0x29   :  { %455 = vmatmul.msk.f32.gmra.mxu3 %vm130_vm0, %v117_v12 }
  0x9d   :  { %v151_v14 = vpop.f32.mrf.mxu0 }
  0x9e   :  { %v152_v16 = vadd.f32 %v477_v13, %v151_v14 }
  0x9f   :  { %v191_v17 = vpop.f32.mrf.mxu1 }
  0xa0   :  { %v207_v18 = vperm.slane %v152_v16, 0  ;;  %v204_v19 = vrot.slane %v152_v16, 1  ;;  %v205_v20 = vrot.slane %v152_v16, 2  ;;  %v192_v21 = vadd.f32 %v478_v15, %v191_v17 }
  0xa1   :  { %v206_v32 = vrot.slane %v152_v16, 3 }
  0xa2   :  { %v215_v22 = vadd.f32 %v207_v18, %v192_v21  ;;  %v208_v23 = vperm.slane %v204_v19, 0  ;;  %v209_v24 = vperm.slane %v205_v20, 0 }
  0xa3   :  { %v194_v25 = vpop.f32.mrf.mxu2  ;;  %v210_v37 = vperm.slane %v206_v32, 0 }
  0xa4   :  { %v197_v26 = vpop.f32.mrf.mxu3  ;;  %480 = vtanh.f32 %v215_v22  ;;  %v195_v27 = vadd.f32 %v478_v15, %v194_v25 }
  0xa5   :  { %v198_v28 = vadd.f32 %v478_v15, %v197_v26 }
  0xa6   :  { %v216_v29 = vadd.f32 %v208_v23, %v195_v27 }
  0xa7   :  { %v217_v30 = vadd.f32 %v209_v24, %v198_v28 }
  0xa8   :  { %482 = vtanh.f32 %v216_v29 }
  0xa9   :  { %484 = vtanh.f32 %v217_v30 }
  0xaa   :  { %v481_v33 = vpop.eup %480 }
  0xab   :  { %v227_v35 = vmul.f32 %v481_v33, %v479_v31 }
  0xac   :  { %v200_v34 = vpop.f32.mrf.mxu3 }
  0xad   :  { %v201_v36 = vadd.f32 %v478_v15, %v200_v34  ;;  %v231_v38 = vsel %vm130_vm0, %v227_v35, 0.0 }
  0xae   :  { %v483_v39 = vpop.eup %482  ;;  %232 = vadd.xlane.f32.xlu0 %v231_v38 }
  0xaf   :  { %v218_v40 = vadd.f32 %v210_v37, %v201_v36  ;;  %v485_v41 = vpop.eup %484  ;;  %v228_v43 = vmul.f32 %v483_v39, %v479_v31 }
  0xb0   :  { %v229_v42 = vmul.f32 %v485_v41, %v479_v31 }
  0xb1   :  { %486 = vtanh.f32 %v218_v40  ;;  %v234_v45 = vsel %vm130_vm0, %v228_v43, 0.0 }
  0xb2   :  { %v237_v44 = vsel %vm130_vm0, %v229_v42, 0.0 }
  0xb3   :  { %238 = vadd.xlane.f32.xlu1 %v237_v44 }
  0xb6   :  { %235 = vadd.xlane.f32.xlu0 %v234_v45 }
  0xb7   :  { %v487_v46 = vpop.eup %486 }
  0xb8   :  { %v230_v47 = vmul.f32 %v487_v46, %v479_v31 }
  0xba   :  { %v240_v48 = vsel %vm130_vm0, %v230_v47, 0.0 }
  0xbb   :  { %241 = vadd.xlane.f32.xlu1 %v240_v48 }
 0x121   :  { %v233_v49 = vpop.xlane.xlu0 %232 }
 0x122   :  { %v245_v54 = vadd.f32 %v244_v51, %v233_v49 }
 0x124   :  { %v255_v59 = vperm.slane %v245_v54, %v777_v53 }
 0x126   :  { %v239_v52 = vpop.xlane.xlu1 %238 }
 0x127   :  { %v247_v57 = vadd.f32 %v244_v51, %v239_v52 }
 0x129   :  { %v236_v55 = vpop.xlane.xlu0 %235  ;;  %v257_v63 = vperm.slane %v247_v57, %v777_v53 }
 0x12a   :  { %v246_v56 = vadd.f32 %v244_v51, %v236_v55  ;;  %v120_v55 = vld [vmem:[#allocation8 + $0x10] sm:$0xff] }
 0x12c   :  { %v256_v58 = vperm.slane %v246_v56, %v777_v53 }
 0x12e   :  { %v242_v60 = vpop.xlane.xlu1 %241  ;;  %v260_v62 = vsel %vm259_vm1, %v256_v58, %v255_v59 }
 0x12f   :  { %v248_v61 = vadd.f32 %v244_v51, %v242_v60  ;;  %v262_v1 = vsel %vm261_vm2, %v257_v63, %v260_v62  ;;  %v119_v63 = vld [vmem:[#allocation8 + $0x8] sm:$0xff] }
 0x131   :  { %v258_v0 = vperm.slane %v248_v61, %v777_v53 }
 0x133   :  { %v264_v2 = vsel %vm263_vm3, %v258_v0, %v262_v1 }
 0x134   :  { %v267_v3 = vsel %vm266_vm4, %v264_v2, -inf }
 0x135   :  { %268 = vmax.xlane.f32.xlu2 %v267_v3 }
 0x1a8   :  { %v269_v5 = vpop.xlane.xlu2 %268 }
 0x1a9   :  { %v271_v6 = vperm.slane %v269_v5, 0  ;;  %v272_v7 = vperm.slane %v269_v5, 1  ;;  %v273_v8 = vperm.slane %v269_v5, 2  ;;  %v274_v9 = vperm.slane %v269_v5, 3 }
 0x1ab   :  { %v279_v10 = vsub.f32 %v245_v54, %v271_v6  ;;  %v280_v11 = vsub.f32 %v246_v56, %v272_v7  ;;  %v281_v12 = vsub.f32 %v247_v57, %v273_v8  ;;  %v282_v16 = vsub.f32 %v248_v61, %v274_v9  ;;  %v118_v54 = vld [vmem:[#allocation8] sm:$0xff] }
 0x1ad   :  { %v283_v13 = vmul.f32 1.442695, %v279_v10  ;;  %v285_v14 = vmul.f32 1.442695, %v280_v11  ;;  %v287_v15 = vmul.f32 1.442695, %v281_v12 }
 0x1ae   :  { %v289_v17 = vmul.f32 1.442695, %v282_v16  ;;  %v121_v11 = vld [vmem:[#allocation8 + $0x18] sm:$0xff] }
 0x1af   :  { %488 = vpow2.f32 %v283_v13 }
 0x1b0   :  { %490 = vpow2.f32 %v285_v14 }
 0x1b1   :  { %492 = vpow2.f32 %v287_v15 }
 0x1b2   :  { %494 = vpow2.f32 %v289_v17 }
 0x1b5   :  { %v489_v18 = vpop.eup %488 }
 0x1b6   :  { %v491_v19 = vpop.eup %490  ;;  %296 = vperm.xlu2 %474, %v489_v18  }
 0x1b7   :  { %v493_v20 = vpop.eup %492  ;;  %299 = vperm.xlu0 %475, %v491_v19  }
 0x1b8   :  { %302 = vperm.xlu1 %476, %v493_v20   ;;  %v495_v21 = vpop.eup %494 }
 0x1be   :  { %305 = vperm.xlu2 %474, %v495_v21  }
 0x210   :  { %v297_v22 = vpop.permute.xlu2 %296 }
 0x211   :  { %v307_v25 = vperm.slane %v297_v22, %v777_v53 }
 0x218   :  { %v306_v23 = vpop.permute.xlu2 %305 }
 0x219   :  { %v310_v29 = vperm.slane %v306_v23, %v777_v53 }
 0x229   :  { %v300_v24 = vpop.permute.xlu0 %299 }
 0x22a   :  { %v303_v26 = vpop.permute.xlu1 %302  ;;  %v308_v27 = vperm.slane %v300_v24, %v777_v53 }
 0x22b   :  { %v309_v28 = vperm.slane %v303_v26, %v777_v53 }
 0x22c   :  { %v311_v30 = vsel %vm259_vm1, %v308_v27, %v307_v25 }
 0x22d   :  { %v312_v31 = vsel %vm261_vm2, %v309_v28, %v311_v30 }
 0x22e   :  { %v313_v32 = vsel %vm263_vm3, %v310_v29, %v312_v31 }
 0x22f   :  { %v315_v33 = vsel %vm266_vm4, %v313_v32, 0.0 }
 0x230   :  { %316 = vadd.xlane.f32.xlu2 %v315_v33 }
 0x2a3   :  { %v317_v34 = vpop.xlane.xlu2 %316 }
 0x2a4   :  { %496 = vrcp.f32 %v317_v34  ;;  %v329_v38 = vand.u32 2147483648, %v317_v34  ;;  %v327_v40 = vand.u32 2147483647, %v317_v34  ;;  %vm323_vm6 = vweird.f32 %v317_v34 }
 0x2a6   :  { %v330_v42 = vor.u32 1.1754944e-38, %v329_v38  ;;  %vm328_vm8 = vcmp.eq.f32.partialorder %v327_v40, 8.507059e+37 }
 0x2aa   :  { %v497_v35 = vpop.eup %496 }
 0x2ab   :  { %v319_v36 = vmul.f32 %v497_v35, %v317_v34  ;;  %vm324_vm5 = vweird.f32 %v497_v35 }
 0x2ac   :  { %vm325_vm7 = vmor %vm323_vm6, %vm324_vm5 }
 0x2ad   :  { %v320_v37 = vsub.f32 1.0, %v319_v36 }
 0x2af   :  { %v321_v39 = vmul.f32 %v497_v35, %v320_v37 }
 0x2b1   :  { %v322_v41 = vadd.f32 %v497_v35, %v321_v39 }
 0x2b3   :  { %v326_v43 = vsel %vm325_vm7, %v497_v35, %v322_v41 }
 0x2b4   :  { %v331_v44 = vsel %vm328_vm8, %v330_v42, %v326_v43 }
 0x2b5   :  { %v335_v45 = vperm.slane %v331_v44, 2  ;;  %v333_v46 = vperm.slane %v331_v44, 0  ;;  %v334_v49 = vperm.slane %v331_v44, 1  ;;  %v336_v51 = vperm.slane %v331_v44, 3 }
 0x2b7   :  { %v343_v47 = vmul.f32 %v493_v20, %v335_v45  ;;  %v341_v48 = vmul.f32 %v489_v18, %v333_v46  ;;  %v342_v50 = vmul.f32 %v491_v19, %v334_v49  ;;  %v344_v52 = vmul.f32 %v495_v21, %v336_v51 }
 0x2b9   :  { %357 = vperm.xlu0 %475, %v343_v47   ;;  %347 = vperm.xlu1 %476, %v341_v48  }
 0x2c1   :  { %352 = vperm.xlu1 %476, %v342_v50  }
 0x2c9   :  { %362 = vperm.xlu1 %476, %v344_v52  }
 0x32b   :  { %v358_v56 = vpop.permute.xlu0 %357  ;;  %v348_v57 = vpop.permute.xlu1 %347 }
 0x32c   :  { %v365_v58 = vmul.f32 %v348_v57, %v118_v54  ;;  %v367_v59 = vmul.f32 %v358_v56, %v120_v55  ;;  %v407_v8 = vperm.slane %v348_v57, %v777_v53  ;;  %v409_v13 = vperm.slane %v358_v56, %v777_v53 }
 0x32e   :  { %v369_v60 = vsel %vm130_vm0, %v365_v58, 0.0  ;;  %v383_v61 = vsel %vm130_vm0, %v367_v59, 0.0 }
 0x32f   :  { %v370_v62 = vrot.slane %v369_v60, 4  ;;  %v384_v1 = vrot.slane %v383_v61, 4 }
 0x331   :  { %v371_v3 = vadd.f32 %v370_v62, %v369_v60  ;;  %v385_v7 = vadd.f32 %v384_v1, %v383_v61 }
 0x333   :  { %v353_v0 = vpop.permute.xlu1 %352  ;;  %v372_v9 = vrot.slane %v371_v3, 2  ;;  %v386_v16 = vrot.slane %v385_v7, 2 }
 0x334   :  { %v366_v2 = vmul.f32 %v353_v0, %v119_v63  ;;  %v408_v5 = vperm.slane %v353_v0, %v777_v53 }
 0x335   :  { %v373_v19 = vadd.f32 %v372_v9, %v371_v3  ;;  %v387_v26 = vadd.f32 %v386_v16, %v385_v7 }
 0x336   :  { %v376_v4 = vsel %vm130_vm0, %v366_v2, 0.0  ;;  %v411_v12 = vsel %vm259_vm1, %v408_v5, %v407_v8 }
 0x337   :  { %v377_v6 = vrot.slane %v376_v4, 4  ;;  %v412_v21 = vsel %vm261_vm2, %v409_v13, %v411_v12  ;;  %v374_v27 = vrot.slane %v373_v19, 1  ;;  %v388_v30 = vrot.slane %v387_v26, 1 }
 0x339   :  { %v378_v10 = vadd.f32 %v377_v6, %v376_v4  ;;  %v375_v31 = vadd.f32 %v374_v27, %v373_v19  ;;  %v389_v35 = vadd.f32 %v388_v30, %v387_v26 }
 0x33b   :  { %v379_v14 = vrot.slane %v378_v10, 2  ;;  %v363_v15 = vpop.permute.xlu1 %362 }
 0x33c   :  { %v368_v17 = vmul.f32 %v363_v15, %v121_v11  ;;  %v410_v18 = vperm.slane %v363_v15, %v777_v53 }
 0x33d   :  { %v380_v20 = vadd.f32 %v379_v14, %v378_v10 }
 0x33e   :  { %v390_v22 = vsel %vm130_vm0, %v368_v17, 0.0  ;;  %v413_v23 = vsel %vm263_vm3, %v410_v18, %v412_v21 }
 0x33f   :  { %v381_v24 = vrot.slane %v380_v20, 1  ;;  %v391_v25 = vrot.slane %v390_v22, 4  ;;  %415 = vst.msk [vmem:[#allocation13] sm:$0xf] %vm266_vm4, %v413_v23 }
 0x340   :  { %437 = dma.vmem_to_hbm [thread:$0]  %s433_s20, 64, %s435_s23, [#allocation14]  }
 0x341   :  { %v392_v28 = vadd.f32 %v391_v25, %v390_v22  ;;  %v382_v29 = vadd.f32 %v381_v24, %v380_v20 }
 0x343   :  { %v393_v53 = vrot.slane %v392_v28, 2  ;;  %v401_v34 = vsel %vm259_vm1, %v382_v29, %v375_v31 }
 0x344   :  { %v402_v37 = vsel %vm261_vm2, %v389_v35, %v401_v34 }
 0x345   :  { %v394_v32 = vadd.f32 %v393_v53, %v392_v28 }
 0x347   :  { %v395_v33 = vrot.slane %v394_v32, 1 }
 0x349   :  { %v396_v36 = vadd.f32 %v395_v33, %v394_v32 }
 0x34b   :  { %v403_v38 = vsel %vm263_vm3, %v396_v36, %v402_v37 }
 0x34c   :  { %406 = vst.msk [vmem:[#allocation12] sm:$0xf] %vm405_vm9, %v403_v38 }
 0x34d   :  { %426 = dma.vmem_to_hbm [thread:$0]  %s422_s24, 64, %s424_s27, [#allocation5]  }
 0x34e   :  { %672 = dma.done.wait [#allocation5], 64  }
 0x34f   :  { %673 = vsyncadd [#allocation5], 4294967232 }
 0x350   :  { %674 = dma.done.wait [#allocation14], 64  }
 0x351   :  { %675 = vsyncadd [#allocation14], 4294967232 }
 0x352   :  { %446 = vsyncpa [#allocation4], 1 }
 0x353   :  { %447 = vsyncpa [#allocation7], 1 }
 0x354   :  { %448 = vsyncpa [#allocation10], 1 }
 0x355   :  { %449 = vsyncpa [#allocation5], 1 }
 0x356   :  { %450 = vsyncpa [#allocation14], 1 }

// kernel: tpu_custom_call.1
= control target key start
LH: loop header
LB: loop body
LE: loop exit
PB: predicated region body
PF: predicated region fallthrough
CT: control target
= control target key end

     0   :  { %17 = vsyncpa [#allocation4], 0  ;;  %s816_s0 = inlined_call_operand.hbm [shape: f32[4,32], index: 0, kind: input, shape index: {}]   ;;  %s817_s1 = inlined_call_operand.hbm [shape: f32[4,8,32], index: 1, kind: input, shape index: {}]   ;;  %s818_s2 = inlined_call_operand.hbm [shape: f32[4,8,32], index: 2, kind: input, shape index: {}]   ;;  %s819_s3 = inlined_call_operand.hbm [shape: f32[32,32], index: 3, kind: input, shape index: {}]   ;;  %s820_s4 = inlined_call_operand.vmem [shape: f32[1,32], index: 4, kind: input, shape index: {}]   ;;  %s821_s5 = inlined_call_operand.hbm [shape: f32[32,32], index: 5, kind: input, shape index: {}]   ;;  %s822_s6 = inlined_call_operand.vmem [shape: f32[1,32], index: 6, kind: input, shape index: {}]   ;;  %s823_s7 = inlined_call_operand.vmem [shape: f32[1,32], index: 7, kind: input, shape index: {}]   ;;  %s824_s8 = inlined_call_operand.<no memory space> [shape: f32[1], index: 8, kind: input, shape index: {}]   ;;  %s825_s9 = inlined_call_operand.hbm [shape: f32[4,32], index: 9, kind: output, shape index: {0}]   ;;  %s826_s10 = inlined_call_operand.hbm [shape: f32[4,8], index: 10, kind: output, shape index: {1}]  }
   0x1   :  { %18 = vsyncpa [#allocation7], 0 }
   0x2   :  { %19 = vsyncpa [#allocation10], 0 }
   0x3   :  { %20 = vsyncpa [#allocation5], 0  ;;  %s37_s15 = sshll.u32 %s817_s1, 4  ;;  %s38_s15 = int_to_ptr.hbm [resolvable:$true] %s37_s15 }
   0x4   :  { %21 = vsyncpa [#allocation14], 0  ;;  %s676_s16 = smov [#allocation6]   ;;  %s63_s20 = sshll.u32 %s819_s3, 4  ;;  %s64_s20 = int_to_ptr.hbm [resolvable:$true] %s63_s20 }
   0x5   :  { %s39_s17 = sshll.u32 %s676_s16, 4  ;;  %s677_s21 = smov 128   ;;  %s40_s17 = int_to_ptr.vmem [resolvable:$true] %s39_s17 }
   0x6   :  { %s678_s22 = smov 8   ;;  %s679_s23 = smov [#allocation9]  }
   0x7   :  { %45 = dma.hbm_to_vmem [thread:$0]  %s38_s15, 512, %s40_s17, [#allocation7], %s677_s21, %s677_s21, %s678_s22  }
   0x8   :  { %s65_s24 = sshll.u32 %s679_s23, 4  ;;  %s27_s27 = sshll.u32 %s816_s0, 4  ;;  %s66_s24 = int_to_ptr.vmem [resolvable:$true] %s65_s24  ;;  %s28_s27 = int_to_ptr.hbm [resolvable:$true] %s27_s27 }
   0x9   :  { %71 = dma.hbm_to_vmem [thread:$0]  %s64_s20, 512, %s66_s24, [#allocation10], %s677_s21, %s677_s21, %s678_s22  }
   0xa   :  { %s50_s29 = sshll.u32 %s818_s2, 4  ;;  %s680_s30 = smov [#allocation3]   ;;  %s51_s29 = int_to_ptr.hbm [resolvable:$true] %s50_s29 }
   0xb   :  { %s29_s11 = sshll.u32 %s680_s30, 4  ;;  %s681_s3 = smov [#allocation8]   ;;  %s30_s11 = int_to_ptr.vmem [resolvable:$true] %s29_s11 }
   0xc   :  { %32 = dma.hbm_to_vmem [thread:$0]  %s28_s27, 64, %s30_s11, [#allocation4]  }
   0xd   :  { %s52_s12 = sshll.u32 %s681_s3, 4  ;;  %s78_s15 = sshll.u32 %s821_s5, 4  ;;  %s53_s12 = int_to_ptr.vmem [resolvable:$true] %s52_s12  ;;  %s79_s15 = int_to_ptr.hbm [resolvable:$true] %s78_s15 }
   0xe   :  { %58 = dma.hbm_to_vmem [thread:$0]  %s51_s29, 512, %s53_s12, [#allocation7], %s677_s21, %s677_s21, %s678_s22  }
   0xf   :  { %s682_s0 = smov [#allocation11]  }
  0x10   :  { %s80_s16 = sshll.u32 %s682_s0, 4  ;;  %s81_s16 = int_to_ptr.vmem [resolvable:$true] %s80_s16 }
  0x11   :  { %86 = dma.hbm_to_vmem [thread:$0]  %s79_s15, 512, %s81_s16, [#allocation10], %s677_s21, %s677_s21, %s678_s22  }
  0x12   :  { %666 = dma.done.wait [#allocation4], 64  }
  0x13   :  { %667 = vsyncadd [#allocation4], 4294967232 }
  0x14   :  { %668 = dma.done.wait [#allocation7], 1024  }
  0x15   :  { %669 = vsyncadd [#allocation7], 4294966272 }
  0x16   :  { %670 = dma.done.wait [#allocation10], 1024  }
  0x17   :  { %671 = vsyncadd [#allocation10], 4294966272  ;;  %v125_v0 = vld [vmem:[#allocation9 + $0x18] sm:$0xff]  ;;  %v124_v2 = vld [vmem:[#allocation9 + $0x10] sm:$0xff]  ;;  %vm130_vm0 = vcmask 261120   ;;  %v253_v50 = vlaneseq  ;;  %v244_v51 = vstv %s824_s8  ;;  %vm259_vm1 = vcmask 1041409  }
  0x18   :  { %v157_v1 = vld [vmem:[#allocation11 + $0x18] sm:$0xff]  ;;  %146 = vmatpush.msra.mxu0 %v125_v0  ;;  %v156_v3 = vld [vmem:[#allocation11 + $0x10] sm:$0xff]  ;;  %v123_v4 = vld [vmem:[#allocation9 + $0x8] sm:$0xff]  ;;  %vm261_vm2 = vcmask 1042434   ;;  %vm263_vm3 = vcmask 1043459   ;;  %vm266_vm4 = vcmask 60416  }
  0x19   :  { %456 = vmatpush.msra.mxu2 %v157_v1  ;;  %457 = vmatpush.msra.mxu3 %v157_v1  ;;  %v155_v5 = vld [vmem:[#allocation11 + $0x8] sm:$0xff]  ;;  %v122_v6 = vld [vmem:[#allocation9] sm:$0xff]  ;;  %v113_v8 = vld [vmem:[#allocation3] sm:$0xf]  ;;  %v777_v53 = vand.u32 127, %v253_v50  ;;  %s684_s8 = smov [#allocation13]  }
  0x1a   :  { %186 = vmatpush.msra.mxu1 %v157_v1  ;;  %147 = vmatpush.msra.mxu0 %v124_v2  ;;  %v154_v7 = vld [vmem:[#allocation11] sm:$0xff]  ;;  %v115_v9 = vld [vmem:[#allocation6 + $0x8] sm:$0xff]  ;;  %v116_v10 = vld [vmem:[#allocation6 + $0x10] sm:$0xff]  ;;  %s432_s20 = sshll.u32 %s684_s8, 4  ;;  %s434_s23 = sshll.u32 %s826_s10, 4  ;;  %vm405_vm9 = vcmask 257024   ;;  %s433_s20 = int_to_ptr.vmem [resolvable:$true] %s432_s20  ;;  %s435_s23 = int_to_ptr.hbm [resolvable:$true] %s434_s23 }
  0x1b   :  { %458 = vmatpush.msra.mxu2 %v156_v3  ;;  %459 = vmatpush.msra.mxu3 %v156_v3  ;;  %v114_v11 = vld [vmem:[#allocation6] sm:$0xff]  ;;  %v117_v12 = vld [vmem:[#allocation6 + $0x18] sm:$0xff]  ;;  %s685_s10 = smov [#allocation12]   ;;  %s423_s27 = sshll.u32 %s825_s9, 4  ;;  %s424_s27 = int_to_ptr.hbm [resolvable:$true] %s423_s27 }
  0x1c   :  { %187 = vmatpush.msra.mxu1 %v156_v3  ;;  %148 = vmatpush.msra.mxu0 %v123_v4  ;;  %v477_v13 = vld [vmem:[%s820_s4] ss:$0 sm:$0xff]  ;;  %v683_v4 = vmov 0   ;;  %s421_s24 = sshll.u32 %s685_s10, 4  ;;  %s422_s24 = int_to_ptr.vmem [resolvable:$true] %s421_s24 }
  0x1d   :  { %460 = vmatpush.msra.mxu2 %v155_v5  ;;  %461 = vmatpush.msra.mxu3 %v155_v5  ;;  %v478_v15 = vld [vmem:[%s822_s6] ss:$0 sm:$0xff] }
  0x1e   :  { %188 = vmatpush.msra.mxu1 %v155_v5  ;;  %149 = vmatpush.msra.mxu0 %v122_v6  ;;  %v479_v31 = vld [vmem:[%s823_s7] ss:$0 sm:$0xff] }
  0x1f   :  { %462 = vmatpush.msra.mxu2 %v154_v7  ;;  %463 = vmatpush.msra.mxu3 %v154_v7 }
  0x20   :  { %451 = vmatmul.msk.f32.vlgmr.msra.gmra.mxu0 %vm130_vm0, %v113_v8  ;;  %453 = vmatmul.msk.f32.vlgmr.msra.gmra.mxu2 %vm130_vm0, %v115_v9 }
  0x21   :  { %454 = vmatmul.msk.f32.vlgmr.msra.gmra.mxu3 %vm130_vm0, %v116_v10  ;;  %189 = vmatpush.msra.mxu1 %v154_v7 }
  0x22   :  { %452 = vmatmul.msk.f32.vlgmr.msra.gmra.mxu1 %vm130_vm0, %v114_v11  ;;  %476 = vset.pattern.permute.xlu1 %v683_v4 }
  0x23   :  { %475 = vset.pattern.permute.xlu0 %v683_v4  ;;  %474 = vset.pattern.permute.xlu2 %v683_v4 }
  0x29   :  { %455 = vmatmul.msk.f32.gmra.mxu3 %vm130_vm0, %v117_v12 }
  0x9d   :  { %v151_v14 = vpop.f32.mrf.mxu0 }
  0x9e   :  { %v152_v16 = vadd.f32 %v477_v13, %v151_v14 }
  0x9f   :  { %v191_v17 = vpop.f32.mrf.mxu1 }
  0xa0   :  { %v207_v18 = vperm.slane %v152_v16, 0  ;;  %v204_v19 = vrot.slane %v152_v16, 1  ;;  %v205_v20 = vrot.slane %v152_v16, 2  ;;  %v192_v21 = vadd.f32 %v478_v15, %v191_v17 }
  0xa1   :  { %v206_v32 = vrot.slane %v152_v16, 3 }
  0xa2   :  { %v215_v22 = vadd.f32 %v207_v18, %v192_v21  ;;  %v208_v23 = vperm.slane %v204_v19, 0  ;;  %v209_v24 = vperm.slane %v205_v20, 0 }
  0xa3   :  { %v194_v25 = vpop.f32.mrf.mxu2  ;;  %v210_v37 = vperm.slane %v206_v32, 0 }
  0xa4   :  { %v197_v26 = vpop.f32.mrf.mxu3  ;;  %480 = vtanh.f32 %v215_v22  ;;  %v195_v27 = vadd.f32 %v478_v15, %v194_v25 }
  0xa5   :  { %v198_v28 = vadd.f32 %v478_v15, %v197_v26 }
  0xa6   :  { %v216_v29 = vadd.f32 %v208_v23, %v195_v27 }
  0xa7   :  { %v217_v30 = vadd.f32 %v209_v24, %v198_v28 }
  0xa8   :  { %482 = vtanh.f32 %v216_v29 }
  0xa9   :  { %484 = vtanh.f32 %v217_v30 }
  0xaa   :  { %v481_v33 = vpop.eup %480 }
  0xab   :  { %v227_v35 = vmul.f32 %v481_v33, %v479_v31 }
  0xac   :  { %v200_v34 = vpop.f32.mrf.mxu3 }
  0xad   :  { %v201_v36 = vadd.f32 %v478_v15, %v200_v34  ;;  %v231_v38 = vsel %vm130_vm0, %v227_v35, 0.0 }
  0xae   :  { %v483_v39 = vpop.eup %482  ;;  %232 = vadd.xlane.f32.xlu0 %v231_v38 }
  0xaf   :  { %v218_v40 = vadd.f32 %v210_v37, %v201_v36  ;;  %v485_v41 = vpop.eup %484  ;;  %v228_v43 = vmul.f32 %v483_v39, %v479_v31 }
  0xb0   :  { %v229_v42 = vmul.f32 %v485_v41, %v479_v31 }
  0xb1   :  { %486 = vtanh.f32 %v218_v40  ;;  %v234_v45 = vsel %vm130_vm0, %v228_v43, 0.0 }
  0xb2   :  { %v237_v44 = vsel %vm130_vm0, %v229_v42, 0.0 }
  0xb3   :  { %238 = vadd.xlane.f32.xlu1 %v237_v44 }
  0xb6   :  { %235 = vadd.xlane.f32.xlu0 %v234_v45 }
  0xb7   :  { %v487_v46 = vpop.eup %486 }
  0xb8   :  { %v230_v47 = vmul.f32 %v487_v46, %v479_v31 }
  0xba   :  { %v240_v48 = vsel %vm130_vm0, %v230_v47, 0.0 }
  0xbb   :  { %241 = vadd.xlane.f32.xlu1 %v240_v48 }
 0x121   :  { %v233_v49 = vpop.xlane.xlu0 %232 }
 0x122   :  { %v245_v54 = vadd.f32 %v244_v51, %v233_v49 }
 0x124   :  { %v255_v59 = vperm.slane %v245_v54, %v777_v53 }
 0x126   :  { %v239_v52 = vpop.xlane.xlu1 %238 }
 0x127   :  { %v247_v57 = vadd.f32 %v244_v51, %v239_v52 }
 0x129   :  { %v236_v55 = vpop.xlane.xlu0 %235  ;;  %v257_v63 = vperm.slane %v247_v57, %v777_v53 }
 0x12a   :  { %v246_v56 = vadd.f32 %v244_v51, %v236_v55  ;;  %v120_v55 = vld [vmem:[#allocation8 + $0x10] sm:$0xff] }
 0x12c   :  { %v256_v58 = vperm.slane %v246_v56, %v777_v53 }
 0x12e   :  { %v242_v60 = vpop.xlane.xlu1 %241  ;;  %v260_v62 = vsel %vm259_vm1, %v256_v58, %v255_v59 }
 0x12f   :  { %v248_v61 = vadd.f32 %v244_v51, %v242_v60  ;;  %v262_v1 = vsel %vm261_vm2, %v257_v63, %v260_v62  ;;  %v119_v63 = vld [vmem:[#allocation8 + $0x8] sm:$0xff] }
 0x131   :  { %v258_v0 = vperm.slane %v248_v61, %v777_v53 }
 0x133   :  { %v264_v2 = vsel %vm263_vm3, %v258_v0, %v262_v1 }
 0x134   :  { %v267_v3 = vsel %vm266_vm4, %v264_v2, -inf }
 0x135   :  { %268 = vmax.xlane.f32.xlu2 %v267_v3 }
 0x1a8   :  { %v269_v5 = vpop.xlane.xlu2 %268 }
 0x1a9   :  { %v271_v6 = vperm.slane %v269_v5, 0  ;;  %v272_v7 = vperm.slane %v269_v5, 1  ;;  %v273_v8 = vperm.slane %v269_v5, 2  ;;  %v274_v9 = vperm.slane %v269_v5, 3 }
 0x1ab   :  { %v279_v10 = vsub.f32 %v245_v54, %v271_v6  ;;  %v280_v11 = vsub.f32 %v246_v56, %v272_v7  ;;  %v281_v12 = vsub.f32 %v247_v57, %v273_v8  ;;  %v282_v16 = vsub.f32 %v248_v61, %v274_v9  ;;  %v118_v54 = vld [vmem:[#allocation8] sm:$0xff] }
 0x1ad   :  { %v283_v13 = vmul.f32 1.442695, %v279_v10  ;;  %v285_v14 = vmul.f32 1.442695, %v280_v11  ;;  %v287_v15 = vmul.f32 1.442695, %v281_v12 }
 0x1ae   :  { %v289_v17 = vmul.f32 1.442695, %v282_v16  ;;  %v121_v11 = vld [vmem:[#allocation8 + $0x18] sm:$0xff] }
 0x1af   :  { %488 = vpow2.f32 %v283_v13 }
 0x1b0   :  { %490 = vpow2.f32 %v285_v14 }
 0x1b1   :  { %492 = vpow2.f32 %v287_v15 }
 0x1b2   :  { %494 = vpow2.f32 %v289_v17 }
 0x1b5   :  { %v489_v18 = vpop.eup %488 }
 0x1b6   :  { %v491_v19 = vpop.eup %490  ;;  %296 = vperm.xlu2 %474, %v489_v18  }
 0x1b7   :  { %v493_v20 = vpop.eup %492  ;;  %299 = vperm.xlu0 %475, %v491_v19  }
 0x1b8   :  { %302 = vperm.xlu1 %476, %v493_v20   ;;  %v495_v21 = vpop.eup %494 }
 0x1be   :  { %305 = vperm.xlu2 %474, %v495_v21  }
 0x210   :  { %v297_v22 = vpop.permute.xlu2 %296 }
 0x211   :  { %v307_v25 = vperm.slane %v297_v22, %v777_v53 }
 0x218   :  { %v306_v23 = vpop.permute.xlu2 %305 }
 0x219   :  { %v310_v29 = vperm.slane %v306_v23, %v777_v53 }
 0x229   :  { %v300_v24 = vpop.permute.xlu0 %299 }
 0x22a   :  { %v303_v26 = vpop.permute.xlu1 %302  ;;  %v308_v27 = vperm.slane %v300_v24, %v777_v53 }
 0x22b   :  { %v309_v28 = vperm.slane %v303_v26, %v777_v53 }
 0x22c   :  { %v311_v30 = vsel %vm259_vm1, %v308_v27, %v307_v25 }
 0x22d   :  { %v312_v31 = vsel %vm261_vm2, %v309_v28, %v311_v30 }
 0x22e   :  { %v313_v32 = vsel %vm263_vm3, %v310_v29, %v312_v31 }
 0x22f   :  { %v315_v33 = vsel %vm266_vm4, %v313_v32, 0.0 }
 0x230   :  { %316 = vadd.xlane.f32.xlu2 %v315_v33 }
 0x2a3   :  { %v317_v34 = vpop.xlane.xlu2 %316 }
 0x2a4   :  { %496 = vrcp.f32 %v317_v34  ;;  %v329_v38 = vand.u32 2147483648, %v317_v34  ;;  %v327_v40 = vand.u32 2147483647, %v317_v34  ;;  %vm323_vm6 = vweird.f32 %v317_v34 }
 0x2a6   :  { %v330_v42 = vor.u32 1.1754944e-38, %v329_v38  ;;  %vm328_vm8 = vcmp.eq.f32.partialorder %v327_v40, 8.507059e+37 }
 0x2aa   :  { %v497_v35 = vpop.eup %496 }
 0x2ab   :  { %v319_v36 = vmul.f32 %v497_v35, %v317_v34  ;;  %vm324_vm5 = vweird.f32 %v497_v35 }
 0x2ac   :  { %vm325_vm7 = vmor %vm323_vm6, %vm324_vm5 }
 0x2ad   :  { %v320_v37 = vsub.f32 1.0, %v319_v36 }
 0x2af   :  { %v321_v39 = vmul.f32 %v497_v35, %v320_v37 }
 0x2b1   :  { %v322_v41 = vadd.f32 %v497_v35, %v321_v39 }
 0x2b3   :  { %v326_v43 = vsel %vm325_vm7, %v497_v35, %v322_v41 }
 0x2b4   :  { %v331_v44 = vsel %vm328_vm8, %v330_v42, %v326_v43 }
 0x2b5   :  { %v335_v45 = vperm.slane %v331_v44, 2  ;;  %v333_v46 = vperm.slane %v331_v44, 0  ;;  %v334_v49 = vperm.slane %v331_v44, 1  ;;  %v336_v51 = vperm.slane %v331_v44, 3 }
 0x2b7   :  { %v343_v47 = vmul.f32 %v493_v20, %v335_v45  ;;  %v341_v48 = vmul.f32 %v489_v18, %v333_v46  ;;  %v342_v50 = vmul.f32 %v491_v19, %v334_v49  ;;  %v344_v52 = vmul.f32 %v495_v21, %v336_v51 }
 0x2b9   :  { %357 = vperm.xlu0 %475, %v343_v47   ;;  %347 = vperm.xlu1 %476, %v341_v48  }
 0x2c1   :  { %352 = vperm.xlu1 %476, %v342_v50  }
 0x2c9   :  { %362 = vperm.xlu1 %476, %v344_v52  }
 0x32b   :  { %v358_v56 = vpop.permute.xlu0 %357  ;;  %v348_v57 = vpop.permute.xlu1 %347 }
 0x32c   :  { %v365_v58 = vmul.f32 %v348_v57, %v118_v54  ;;  %v367_v59 = vmul.f32 %v358_v56, %v120_v55  ;;  %v407_v8 = vperm.slane %v348_v57, %v777_v53  ;;  %v409_v13 = vperm.slane %v358_v56, %v777_v53 }
 0x32e   :  { %v369_v60 = vsel %vm130_vm0, %v365_v58, 0.0  ;;  %v383_v61 = vsel %vm130_vm0, %v367_v59, 0.0 }
 0x32f   :  { %v370_v62 = vrot.slane %v369_v60, 4  ;;  %v384_v1 = vrot.slane %v383_v61, 4 }
 0x331   :  { %v371_v3 = vadd.f32 %v370_v62, %v369_v60  ;;  %v385_v7 = vadd.f32 %v384_v1, %v383_v61 }
 0x333   :  { %v353_v0 = vpop.permute.xlu1 %352  ;;  %v372_v9 = vrot.slane %v371_v3, 2  ;;  %v386_v16 = vrot.slane %v385_v7, 2 }
 0x334   :  { %v366_v2 = vmul.f32 %v353_v0, %v119_v63  ;;  %v408_v5 = vperm.slane %v353_v0, %v777_v53 }
 0x335   :  { %v373_v19 = vadd.f32 %v372_v9, %v371_v3  ;;  %v387_v26 = vadd.f32 %v386_v16, %v385_v7 }
 0x336   :  { %v376_v4 = vsel %vm130_vm0, %v366_v2, 0.0  ;;  %v411_v12 = vsel %vm259_vm1, %v408_v5, %v407_v8 }
 0x337   :  { %v377_v6 = vrot.slane %v376_v4, 4  ;;  %v412_v21 = vsel %vm261_vm2, %v409_v13, %v411_v12  ;;  %v374_v27 = vrot.slane %v373_v19, 1  ;;  %v388_v30 = vrot.slane %v387_v26, 1 }
 0x339   :  { %v378_v10 = vadd.f32 %v377_v6, %v376_v4  ;;  %v375_v31 = vadd.f32 %v374_v27, %v373_v19  ;;  %v389_v35 = vadd.f32 %v388_v30, %v387_v26 }
 0x33b   :  { %v379_v14 = vrot.slane %v378_v10, 2  ;;  %v363_v15 = vpop.permute.xlu1 %362 }
 0x33c   :  { %v368_v17 = vmul.f32 %v363_v15, %v121_v11  ;;  %v410_v18 = vperm.slane %v363_v15, %v777_v53 }
 0x33d   :  { %v380_v20 = vadd.f32 %v379_v14, %v378_v10 }
 0x33e   :  { %v390_v22 = vsel %vm130_vm0, %v368_v17, 0.0  ;;  %v413_v23 = vsel %vm263_vm3, %v410_v18, %v412_v21 }
 0x33f   :  { %v381_v24 = vrot.slane %v380_v20, 1  ;;  %v391_v25 = vrot.slane %v390_v22, 4  ;;  %415 = vst.msk [vmem:[#allocation13] sm:$0xf] %vm266_vm4, %v413_v23 }
 0x340   :  { %437 = dma.vmem_to_hbm [thread:$0]  %s433_s20, 64, %s435_s23, [#allocation14]  }
 0x341   :  { %v392_v28 = vadd.f32 %v391_v25, %v390_v22  ;;  %v382_v29 = vadd.f32 %v381_v24, %v380_v20 }
 0x343   :  { %v393_v53 = vrot.slane %v392_v28, 2  ;;  %v401_v34 = vsel %vm259_vm1, %v382_v29, %v375_v31 }
 0x344   :  { %v402_v37 = vsel %vm261_vm2, %v389_v35, %v401_v34 }
 0x345   :  { %v394_v32 = vadd.f32 %v393_v53, %v392_v28 }
 0x347   :  { %v395_v33 = vrot.slane %v394_v32, 1 }
 0x349   :  { %v396_v36 = vadd.f32 %v395_v33, %v394_v32 }
 0x34b   :  { %v403_v38 = vsel %vm263_vm3, %v396_v36, %v402_v37 }
 0x34c   :  { %406 = vst.msk [vmem:[#allocation12] sm:$0xf] %vm405_vm9, %v403_v38 }
 0x34d   :  { %426 = dma.vmem_to_hbm [thread:$0]  %s422_s24, 64, %s424_s27, [#allocation5]  }
 0x34e   :  { %672 = dma.done.wait [#allocation5], 64  }
 0x34f   :  { %673 = vsyncadd [#allocation5], 4294967232 }
 0x350   :  { %674 = dma.done.wait [#allocation14], 64  }
 0x351   :  { %675 = vsyncadd [#allocation14], 4294967232 }
 0x352   :  { %446 = vsyncpa [#allocation4], 1 }
 0x353   :  { %447 = vsyncpa [#allocation7], 1 }
 0x354   :  { %448 = vsyncpa [#allocation10], 1 }
 0x355   :  { %449 = vsyncpa [#allocation5], 1 }
 0x356   :  { %450 = vsyncpa [#allocation14], 1 }

</bundles_post_ra>
